<compile_context>
chip_gen: v5e
topology: v5e:2x2
jax: 0.10.0
libtpu: 0.0.40
codegen_flags: <defaults>
</compile_context>

<pallas_src>
import functools

import jax
import jax.numpy as jnp
from jax.experimental import pallas as pl
from jax.experimental.pallas import tpu as pltpu

PAD = 128          # hidden / output feature dims are padded to one lane width
NUM_LAYERS = 4


def _round_up(x, m):
    return ((x + m - 1) // m) * m


def actor_kernel(x_ref, w_ref, b_ref, probs_ref, *, in_pad, use_bf16):
    """x_ref: (tb, in_pad) f32; w_ref: (4*PAD, PAD) f32/bf16 packed;
    b_ref: (8, PAD) f32 packed; probs_ref: (tb, PAD) f32."""
    h = x_ref[...]
    if use_bf16:
        h = h.astype(jnp.bfloat16)          # cheap (tb, in_pad) cast stays in-kernel

    for layer in range(NUM_LAYERS):
        k = in_pad if layer == 0 else PAD
        w = w_ref[pl.ds(layer * PAD, k), :]              # static slice -> free view
        acc = jnp.dot(h, w, preferred_element_type=jnp.float32)
        b = b_ref[pl.ds(layer, 1), :]                    # (1, PAD), broadcast over rows
        z = acc + b                                      # f32 epilogue: keeps the
        if layer < NUM_LAYERS - 1:                       # -1e30 pad-class bias exact
            z = jnp.maximum(z, 0.0)                      # ReLU
            h = z.astype(jnp.bfloat16) if use_bf16 else z
        else:
            h = z                                        # final logits, f32

    # Numerically-stable softmax over the padded class axis.  Padded classes
    # carry a -1e30 bias (f32) -> exp underflows to exactly 0, so the real
    # classes sum to 1.  Exact (tb, 1) divide -> probs sum to 1 within f32 eps.
    m = jnp.max(h, axis=-1, keepdims=True)
    e = jnp.exp(h - m)
    denom = jnp.sum(e, axis=-1, keepdims=True)
    probs_ref[...] = e * (1.0 / denom)


def actor_forward(state, w_packed, b_packed, output_dim, *,
                  block_b=512, use_bf16=False, vmem_limit_bytes=None):
    """state: (B, input_dim) f32.  Returns categorical probs (B, output_dim)."""
    b, in_dim = state.shape
    in_pad = _round_up(in_dim, 8)

    tb = min(block_b, _round_up(b, 8))                   # batch tile (multiple of 8)
    # If the whole batch fits in one tile, split it so the "parallel" batch
    # grid has >= 2 steps (keeps both TensorCores busy on v7x).
    if tb >= b and b >= 16:
        tb = _round_up((b + 1) // 2, 8)
    b_pad = _round_up(b, tb)

    # Only pad batch rows (and width to a sublane multiple) -- no 128-lane pad.
    x = state
    if (b_pad, in_pad) != (b, in_dim):
        x = jnp.zeros((b_pad, in_pad), state.dtype).at[:b, :in_dim].set(state)

    if use_bf16 and w_packed.dtype != jnp.bfloat16:
        # Prefer packing directly in bf16 (pack_actor_params(weight_dtype=...))
        # so this per-call cast never runs.
        w_packed = w_packed.astype(jnp.bfloat16)

    kernel = functools.partial(actor_kernel, in_pad=in_pad, use_bf16=use_bf16)
    grid = (b_pad // tb,)

    probs_padded = pl.pallas_call(
        kernel,
        out_shape=jax.ShapeDtypeStruct((b_pad, PAD), jnp.float32),
        grid_spec=pltpu.PrefetchScalarGridSpec(
            num_scalar_prefetch=0,
            grid=grid,
            in_specs=[
                pl.BlockSpec((tb, in_pad), lambda i: (i, 0)),               # state tile
                pl.BlockSpec((NUM_LAYERS * PAD, PAD), lambda i: (0, 0)),    # weights (resident)
                pl.BlockSpec((8, PAD), lambda i: (0, 0)),                   # biases  (resident)
            ],
            out_specs=pl.BlockSpec((tb, PAD), lambda i: (i, 0)),
        ),
        compiler_params=pltpu.CompilerParams(
            dimension_semantics=("parallel",),
            # Only needed on v5e (16 MiB scoped default) for block_b >~ 2048.
            vmem_limit_bytes=vmem_limit_bytes),
    )(x, w_packed, b_packed)

    return probs_padded[:b, :output_dim]


def init_actor_params(key, input_dim, output_dim, h1, h2, h3):
    """nn.Linear-style U(-1/sqrt(fan_in), 1/sqrt(fan_in)) init.
    Weights stored as (in_features, out_features); biases as (out_features,)."""
    dims = [(input_dim, h1), (h1, h2), (h2, h3), (h3, output_dim)]
    params = {}
    for i, (fan_in, fan_out) in enumerate(dims, start=1):
        key, kw, kb = jax.random.split(key, 3)
        bound = 1.0 / jnp.sqrt(jnp.float32(fan_in))
        params[f"w{i}"] = jax.random.uniform(
            kw, (fan_in, fan_out), jnp.float32, minval=-bound, maxval=bound)
        params[f"b{i}"] = jax.random.uniform(
            kb, (fan_out,), jnp.float32, minval=-bound, maxval=bound)
    return params


def pack_actor_params(params, dims, *, weight_dtype=jnp.float32):
    """Pack 4 (w, b) pairs into one (4*PAD, PAD) weight slab (f32 or bf16) and
    one (8, PAD) f32 bias slab, zero-padded to lane-dense 128-wide layers.
    Padded output classes get a -1e30 bias so softmax gives them exactly zero
    probability (relies on the kernel's f32 bias add / epilogue)."""
    assert all(d <= PAD for d in dims), "feature dims must be <= 128"
    w_packed = jnp.zeros((NUM_LAYERS * PAD, PAD), jnp.float32)
    b_packed = jnp.zeros((8, PAD), jnp.float32)
    for i in range(NUM_LAYERS):
        fan_in, fan_out = dims[i], dims[i + 1]
        w_packed = w_packed.at[i * PAD:i * PAD + fan_in, :fan_out].set(
            params[f"w{i + 1}"])
        b_packed = b_packed.at[i, :fan_out].set(params[f"b{i + 1}"])
    b_packed = b_packed.at[NUM_LAYERS - 1, dims[-1]:].set(-1e30)
    return w_packed.astype(weight_dtype), b_packed


def actor_reference(state, params):
    """Pure-JAX reference of the PyTorch forward (returns softmax probs)."""
    h = state
    for i in range(1, NUM_LAYERS):
        h = jnp.maximum(h @ params[f"w{i}"] + params[f"b{i}"], 0.0)
    logits = h @ params[f"w{NUM_LAYERS}"] + params[f"b{NUM_LAYERS}"]
    return jax.nn.softmax(logits, axis=-1)


if __name__ == "__main__":
    # Small shapes consistent with the module's forward.
    batch = 8
    input_dim, output_dim = 16, 8
    hidden1_dim, hidden2_dim, hidden3_dim = 32, 32, 32
    dims = (input_dim, hidden1_dim, hidden2_dim, hidden3_dim, output_dim)

    key = jax.random.PRNGKey(0)
    key, k_state = jax.random.split(key)
    state = jax.random.normal(k_state, (batch, input_dim), dtype=jnp.float32)

    params = init_actor_params(key, input_dim, output_dim,
                               hidden1_dim, hidden2_dim, hidden3_dim)
    w_f32, b_packed = pack_actor_params(params, dims)

    # 1) Single-tile f32 path (B=8 -> grid=(1,)), exact parity with reference.
    probs = jax.block_until_ready(
        actor_forward(state, w_f32, b_packed, output_dim))
    ref = actor_reference(state, params)
    assert probs.shape == (batch, output_dim)
    assert jnp.allclose(jnp.sum(probs, axis=-1), 1.0, atol=1e-3)
    assert jnp.allclose(probs, ref, atol=2e-3, rtol=2e-3)

    # 2) Multi-tile f32 batched path (parallel batch grid + row padding).
    key, k2 = jax.random.split(key)
    state2 = jax.random.normal(k2, (200, input_dim), dtype=jnp.float32)
    probs2 = jax.block_until_ready(
        actor_forward(state2, w_f32, b_packed, output_dim, block_b=64))
    ref2 = actor_reference(state2, params)
    assert probs2.shape == (200, output_dim)
    assert jnp.allclose(jnp.sum(probs2, axis=-1), 1.0, atol=1e-3)
    assert jnp.allclose(probs2, ref2, atol=2e-3, rtol=2e-3)

    # 3) bf16 MXU path (v6e/v7x fast path): weights pre-packed in bf16,
    #    f32 accumulate + f32 epilogue; also exercises the >=2-tile split.
    w_bf16, _ = pack_actor_params(params, dims, weight_dtype=jnp.bfloat16)
    key, k3 = jax.random.split(key)
    state3 = jax.random.normal(k3, (64, input_dim), dtype=jnp.float32)
    probs3 = jax.block_until_ready(
        actor_forward(state3, w_bf16, b_packed, output_dim, use_bf16=True))
    ref3 = actor_reference(state3, params)
    assert probs3.shape == (64, output_dim)
    assert jnp.allclose(jnp.sum(probs3, axis=-1), 1.0, atol=1e-3)
    assert jnp.allclose(probs3, ref3, atol=2e-2, rtol=2e-2)

    # NOTE: the torch module returns a Categorical distribution object; the
    # kernel returns its `probs`, which fully determine the distribution.
    print("KERNEL_OK")
</pallas_src>

<mosaic_0001>
module attributes {stable_mosaic.version = 11 : i64} {
  func.func @actor_kernel(%arg0: i32, %arg1: memref<8x16xf32, #tpu.memory_space<vmem>>, %arg2: memref<512x128xf32, #tpu.memory_space<vmem>>, %arg3: memref<8x128xf32, #tpu.memory_space<vmem>>, %arg4: memref<8x128xf32, #tpu.memory_space<vmem>>) attributes {dimension_semantics = [#tpu.dimension_semantics<parallel>], iteration_bounds = array<i64: 1>, scalar_prefetch = 0 : i64, scratch_operands = 0 : i64, tpu.core_type = #tpu.core_type<tc>, window_params = [{transform_indices = @transform_0, window_bounds = array<i64: 8, 16>}, {pipeline_mode = #tpu.pipeline_mode<synchronous>, transform_indices = @transform_1, window_bounds = array<i64: 512, 128>}, {pipeline_mode = #tpu.pipeline_mode<synchronous>, transform_indices = @transform_2, window_bounds = array<i64: 8, 128>}, {transform_indices = @transform_3, window_bounds = array<i64: 8, 128>}]} {
    %c0 = arith.constant 0 : index
    %c0_0 = arith.constant 0 : index
    %0 = vector.load %arg1[%c0, %c0_0] : memref<8x16xf32, #tpu.memory_space<vmem>>, vector<8x16xf32>
    %c0_1 = arith.constant 0 : index
    %c0_2 = arith.constant 0 : index
    %1 = vector.load %arg2[%c0_1, %c0_2] : memref<512x128xf32, #tpu.memory_space<vmem>>, vector<16x128xf32>
    %cst = arith.constant dense<0.000000e+00> : vector<8x128xf32>
    %2 = tpu.matmul %0, %1, %cst {dimension_numbers = #tpu.dot_dimension_numbers<[1], [0], [0], [1], [0, 0, 1, 1], [], []>} : vector<8x16xf32>, vector<16x128xf32>, vector<8x128xf32> -> vector<8x128xf32>
    %c0_3 = arith.constant 0 : index
    %c0_4 = arith.constant 0 : index
    %3 = vector.load %arg3[%c0_3, %c0_4] : memref<8x128xf32, #tpu.memory_space<vmem>>, vector<1x128xf32>
    %4 = vector.broadcast %3 : vector<1x128xf32> to vector<8x128xf32>
    %5 = arith.addf %2, %4 : vector<8x128xf32>
    %cst_5 = arith.constant 0.000000e+00 : f32
    %6 = vector.broadcast %cst_5 : f32 to vector<8x128xf32>
    %7 = arith.maximumf %5, %6 : vector<8x128xf32>
    %c128 = arith.constant 128 : index
    %c0_6 = arith.constant 0 : index
    %8 = vector.load %arg2[%c128, %c0_6] : memref<512x128xf32, #tpu.memory_space<vmem>>, vector<128x128xf32>
    %cst_7 = arith.constant dense<0.000000e+00> : vector<8x128xf32>
    %9 = tpu.matmul %7, %8, %cst_7 {dimension_numbers = #tpu.dot_dimension_numbers<[1], [0], [0], [1], [0, 0, 1, 1], [], []>} : vector<8x128xf32>, vector<128x128xf32>, vector<8x128xf32> -> vector<8x128xf32>
    %c1 = arith.constant 1 : index
    %c0_8 = arith.constant 0 : index
    %10 = vector.load %arg3[%c1, %c0_8] : memref<8x128xf32, #tpu.memory_space<vmem>>, vector<1x128xf32>
    %11 = vector.broadcast %10 : vector<1x128xf32> to vector<8x128xf32>
    %12 = arith.addf %9, %11 : vector<8x128xf32>
    %cst_9 = arith.constant 0.000000e+00 : f32
    %13 = vector.broadcast %cst_9 : f32 to vector<8x128xf32>
    %14 = arith.maximumf %12, %13 : vector<8x128xf32>
    %c256 = arith.constant 256 : index
    %c0_10 = arith.constant 0 : index
    %15 = vector.load %arg2[%c256, %c0_10] : memref<512x128xf32, #tpu.memory_space<vmem>>, vector<128x128xf32>
    %cst_11 = arith.constant dense<0.000000e+00> : vector<8x128xf32>
    %16 = tpu.matmul %14, %15, %cst_11 {dimension_numbers = #tpu.dot_dimension_numbers<[1], [0], [0], [1], [0, 0, 1, 1], [], []>} : vector<8x128xf32>, vector<128x128xf32>, vector<8x128xf32> -> vector<8x128xf32>
    %c2 = arith.constant 2 : index
    %c0_12 = arith.constant 0 : index
    %17 = vector.load %arg3[%c2, %c0_12] : memref<8x128xf32, #tpu.memory_space<vmem>>, vector<1x128xf32>
    %18 = vector.broadcast %17 : vector<1x128xf32> to vector<8x128xf32>
    %19 = arith.addf %16, %18 : vector<8x128xf32>
    %cst_13 = arith.constant 0.000000e+00 : f32
    %20 = vector.broadcast %cst_13 : f32 to vector<8x128xf32>
    %21 = arith.maximumf %19, %20 : vector<8x128xf32>
    %c384 = arith.constant 384 : index
    %c0_14 = arith.constant 0 : index
    %22 = vector.load %arg2[%c384, %c0_14] : memref<512x128xf32, #tpu.memory_space<vmem>>, vector<128x128xf32>
    %cst_15 = arith.constant dense<0.000000e+00> : vector<8x128xf32>
    %23 = tpu.matmul %21, %22, %cst_15 {dimension_numbers = #tpu.dot_dimension_numbers<[1], [0], [0], [1], [0, 0, 1, 1], [], []>} : vector<8x128xf32>, vector<128x128xf32>, vector<8x128xf32> -> vector<8x128xf32>
    %c3 = arith.constant 3 : index
    %c0_16 = arith.constant 0 : index
    %24 = vector.load %arg3[%c3, %c0_16] : memref<8x128xf32, #tpu.memory_space<vmem>>, vector<1x128xf32>
    %25 = vector.broadcast %24 : vector<1x128xf32> to vector<8x128xf32>
    %26 = arith.addf %23, %25 : vector<8x128xf32>
    %cst_17 = arith.constant dense<0xFF800000> : vector<8xf32>
    %27 = vector.multi_reduction <maximumf>, %26, %cst_17 [1] : vector<8x128xf32> to vector<8xf32>
    %28 = vector.shape_cast %27 : vector<8xf32> to vector<8x1xf32>
    %29 = vector.broadcast %28 : vector<8x1xf32> to vector<8x128xf32>
    %30 = arith.subf %26, %29 : vector<8x128xf32>
    %31 = math.exp %30 : vector<8x128xf32>
    %cst_18 = arith.constant dense<0.000000e+00> : vector<8xf32>
    %32 = vector.multi_reduction <add>, %31, %cst_18 [1] : vector<8x128xf32> to vector<8xf32>
    %33 = vector.shape_cast %32 : vector<8xf32> to vector<8x1xf32>
    %cst_19 = arith.constant 1.000000e+00 : f32
    %34 = vector.broadcast %cst_19 : f32 to vector<8x1xf32>
    %35 = arith.divf %34, %33 : vector<8x1xf32>
    %36 = vector.broadcast %35 : vector<8x1xf32> to vector<8x128xf32>
    %37 = arith.mulf %31, %36 : vector<8x128xf32>
    %c0_20 = arith.constant 0 : index
    %c0_21 = arith.constant 0 : index
    %38 = vector.load %arg4[%c0_20, %c0_21] : memref<8x128xf32, #tpu.memory_space<vmem>>, vector<8x128xf32>
    tpu.vector_store %arg4[%c0_20, %c0_21], %37 {strides = array<i32>} : memref<8x128xf32, #tpu.memory_space<vmem>>, vector<8x128xf32>,
    return
  }
  func.func @transform_0(%arg0: i32) -> (i32, i32) {
    %c0_i32 = arith.constant 0 : i32
    %c0_i32_0 = arith.constant 0 : i32
    return %arg0, %c0_i32 : i32, i32
  }
  func.func @transform_1(%arg0: i32) -> (i32, i32) {
    %c0_i32 = arith.constant 0 : i32
    %c0_i32_0 = arith.constant 0 : i32
    %c0_i32_1 = arith.constant 0 : i32
    return %c0_i32, %c0_i32_0 : i32, i32
  }
  func.func @transform_2(%arg0: i32) -> (i32, i32) {
    %c0_i32 = arith.constant 0 : i32
    %c0_i32_0 = arith.constant 0 : i32
    %c0_i32_1 = arith.constant 0 : i32
    return %c0_i32, %c0_i32_0 : i32, i32
  }
  func.func @transform_3(%arg0: i32) -> (i32, i32) {
    %c0_i32 = arith.constant 0 : i32
    %c0_i32_0 = arith.constant 0 : i32
    return %arg0, %c0_i32 : i32, i32
  }
}

</mosaic_0001>

<bundles_post_ra>
// kernel: tpu_custom_call.1
= control target key start
LH: loop header
LB: loop body
LE: loop exit
PB: predicated region body
PF: predicated region fallthrough
CT: control target
= control target key end

     0   :  { %8 = vsyncpa [#allocation3], 0  ;;  %s401_s0 = inlined_call_operand.hbm [shape: f32[8,16], index: 0, kind: input, shape index: {}]   ;;  %s402_s1 = inlined_call_operand.hbm [shape: f32[512,128], index: 1, kind: input, shape index: {}]   ;;  %s403_s2 = inlined_call_operand.hbm [shape: f32[8,128], index: 2, kind: input, shape index: {}]   ;;  %s404_s3 = inlined_call_operand.hbm [shape: f32[8,128], index: 3, kind: output, shape index: {}]  }
   0x1   :  { %9 = vsyncpa [#allocation6], 0  ;;  %s26_s14 = sshll.u32 %s402_s1, 4  ;;  %s27_s14 = int_to_ptr.hbm [resolvable:$true] %s26_s14 }
   0x2   :  { %10 = vsyncpa [#allocation4], 0  ;;  %s363_s15 = smov [#allocation5]   ;;  %s16_s19 = sshll.u32 %s401_s0, 4  ;;  %s17_s19 = int_to_ptr.hbm [resolvable:$true] %s16_s19 }
   0x3   :  { %s28_s16 = sshll.u32 %s363_s15, 4  ;;  %s364_s20 = smov 128   ;;  %s29_s16 = int_to_ptr.vmem [resolvable:$true] %s28_s16 }
   0x4   :  { %s365_s21 = smov 8   ;;  %s366_s22 = smov [#allocation2]  }
   0x5   :  { %34 = dma.hbm_to_vmem [thread:$0]  %s27_s14, 8192, %s29_s16, [#allocation6], %s364_s20, %s364_s20, %s365_s21  }
   0x6   :  { %s18_s23 = sshll.u32 %s366_s22, 4  ;;  %s40_s26 = sshll.u32 %s403_s2, 4  ;;  %s19_s23 = int_to_ptr.vmem [resolvable:$true] %s18_s23  ;;  %s41_s26 = int_to_ptr.hbm [resolvable:$true] %s40_s26 }
   0x7   :  { %21 = dma.hbm_to_vmem [thread:$0]  %s17_s19, 128, %s19_s23, [#allocation3]  }
   0x8   :  { %s367_s1 = smov [#allocation7]  }
   0x9   :  { %s42_s27 = sshll.u32 %s367_s1, 4  ;;  %s43_s27 = int_to_ptr.vmem [resolvable:$true] %s42_s27 }
   0xa   :  { %45 = dma.hbm_to_vmem [thread:$0]  %s41_s26, 128, %s43_s27, [#allocation6]  }
   0xb   :  { %357 = dma.done.wait [#allocation3], 128  }
   0xc   :  { %358 = vsyncadd [#allocation3], 4294967168 }
   0xd   :  { %359 = dma.done.wait [#allocation6], 8320  }
   0xe   :  { %360 = vsyncadd [#allocation6], 4294958976  ;;  %v60_v0 = vld [vmem:[#allocation5 + $0x8] sm:$0xff]  ;;  %v59_v1 = vld [vmem:[#allocation5] sm:$0xff]  ;;  %vm63_vm0 = vcmask 130048   ;;  %s368_s0 = smov [#allocation8]  }
   0xf   :  { %81 = vmatpush.msra.mxu0 %v60_v0  ;;  %v58_v2 = vld [vmem:[#allocation2] sm:$0xff]  ;;  %v102_v4 = vld [vmem:[#allocation5 + $0xf0] sm:$0xff]  ;;  %v101_v5 = vld [vmem:[#allocation5 + $0xe8] sm:$0xff]  ;;  %s233_s2 = sshll.u32 %s368_s0, 4  ;;  %s235_s30 = sshll.u32 %s404_s3, 4  ;;  %s234_s2 = int_to_ptr.vmem [resolvable:$true] %s233_s2  ;;  %s236_s30 = int_to_ptr.hbm [resolvable:$true] %s235_s30 }
  0x10   :  { %v103_v3 = vld [vmem:[#allocation5 + $0xf8] sm:$0xff]  ;;  %v100_v6 = vld [vmem:[#allocation5 + $0xe0] sm:$0xff]  ;;  %v98_v8 = vld [vmem:[#allocation5 + $0xd0] sm:$0xff] }
  0x11   :  { %106 = vmatpush.msra.mxu1 %v103_v3  ;;  %82 = vmatpush.msra.mxu0 %v59_v1  ;;  %v99_v7 = vld [vmem:[#allocation5 + $0xd8] sm:$0xff]  ;;  %v97_v9 = vld [vmem:[#allocation5 + $0xc8] sm:$0xff]  ;;  %v96_v10 = vld [vmem:[#allocation5 + $0xc0] sm:$0xff] }
  0x12   :  { %246 = vmatmul.msk.f32.vlgmr.msra.gmra.mxu0 %vm63_vm0, %v58_v2  ;;  %v95_v11 = vld [vmem:[#allocation5 + $0xb8] sm:$0xff]  ;;  %v94_v12 = vld [vmem:[#allocation5 + $0xb0] sm:$0xff]  ;;  %v93_v13 = vld [vmem:[#allocation5 + $0xa8] sm:$0xff] }
  0x13   :  { %107 = vmatpush.msra.mxu1 %v102_v4  ;;  %v92_v14 = vld [vmem:[#allocation5 + $0xa0] sm:$0xff]  ;;  %v91_v15 = vld [vmem:[#allocation5 + $0x98] sm:$0xff]  ;;  %v90_v16 = vld [vmem:[#allocation5 + $0x90] sm:$0xff] }
  0x14   :  { %v89_v17 = vld [vmem:[#allocation5 + $0x88] sm:$0xff]  ;;  %v88_v18 = vld [vmem:[#allocation5 + $0x80] sm:$0xff]  ;;  %v142_v19 = vld [vmem:[#allocation5 + $0x178] sm:$0xff] }
  0x15   :  { %108 = vmatpush.msra.mxu1 %v101_v5  ;;  %v141_v20 = vld [vmem:[#allocation5 + $0x170] sm:$0xff]  ;;  %145 = vmatpush.msra.mxu2 %v142_v19  ;;  %v140_v21 = vld [vmem:[#allocation5 + $0x168] sm:$0xff]  ;;  %v139_v22 = vld [vmem:[#allocation5 + $0x160] sm:$0xff] }
  0x16   :  { %v138_v23 = vld [vmem:[#allocation5 + $0x158] sm:$0xff]  ;;  %v137_v24 = vld [vmem:[#allocation5 + $0x150] sm:$0xff]  ;;  %v136_v25 = vld [vmem:[#allocation5 + $0x148] sm:$0xff] }
  0x17   :  { %109 = vmatpush.msra.mxu1 %v100_v6  ;;  %146 = vmatpush.msra.mxu2 %v141_v20  ;;  %v135_v26 = vld [vmem:[#allocation5 + $0x140] sm:$0xff]  ;;  %v134_v27 = vld [vmem:[#allocation5 + $0x138] sm:$0xff]  ;;  %v133_v28 = vld [vmem:[#allocation5 + $0x130] sm:$0xff] }
  0x18   :  { %v132_v29 = vld [vmem:[#allocation5 + $0x128] sm:$0xff]  ;;  %v131_v30 = vld [vmem:[#allocation5 + $0x120] sm:$0xff]  ;;  %v130_v31 = vld [vmem:[#allocation5 + $0x118] sm:$0xff] }
  0x19   :  { %110 = vmatpush.msra.mxu1 %v99_v7  ;;  %147 = vmatpush.msra.mxu2 %v140_v21  ;;  %v253_v32 = vld [vmem:[#allocation7] ss:$0 sm:$0xff]  ;;  %v129_v36 = vld [vmem:[#allocation5 + $0x110] sm:$0xff]  ;;  %v128_v37 = vld [vmem:[#allocation5 + $0x108] sm:$0xff] }
  0x1a   :  { %v127_v38 = vld [vmem:[#allocation5 + $0x100] sm:$0xff]  ;;  %v181_v39 = vld [vmem:[#allocation5 + $0x1f8] sm:$0xff]  ;;  %v180_v40 = vld [vmem:[#allocation5 + $0x1f0] sm:$0xff] }
  0x1b   :  { %111 = vmatpush.msra.mxu1 %v98_v8  ;;  %148 = vmatpush.msra.mxu2 %v139_v22  ;;  %v179_v41 = vld [vmem:[#allocation5 + $0x1e8] sm:$0xff]  ;;  %v178_v42 = vld [vmem:[#allocation5 + $0x1e0] sm:$0xff]  ;;  %v177_v43 = vld [vmem:[#allocation5 + $0x1d8] sm:$0xff] }
  0x1c   :  { %184 = vmatpush.msra.mxu3 %v181_v39  ;;  %v176_v44 = vld [vmem:[#allocation5 + $0x1d0] sm:$0xff]  ;;  %v175_v45 = vld [vmem:[#allocation5 + $0x1c8] sm:$0xff]  ;;  %v174_v46 = vld [vmem:[#allocation5 + $0x1c0] sm:$0xff] }
  0x1d   :  { %112 = vmatpush.msra.mxu1 %v97_v9  ;;  %149 = vmatpush.msra.mxu2 %v138_v23  ;;  %v173_v47 = vld [vmem:[#allocation5 + $0x1b8] sm:$0xff]  ;;  %v172_v48 = vld [vmem:[#allocation5 + $0x1b0] sm:$0xff]  ;;  %v171_v49 = vld [vmem:[#allocation5 + $0x1a8] sm:$0xff] }
  0x1e   :  { %185 = vmatpush.msra.mxu3 %v180_v40  ;;  %v170_v50 = vld [vmem:[#allocation5 + $0x1a0] sm:$0xff]  ;;  %v169_v51 = vld [vmem:[#allocation5 + $0x198] sm:$0xff]  ;;  %v168_v56 = vld [vmem:[#allocation5 + $0x190] sm:$0xff] }
  0x1f   :  { %113 = vmatpush.msra.mxu1 %v96_v10  ;;  %150 = vmatpush.msra.mxu2 %v137_v24  ;;  %v254_v52 = vld [vmem:[#allocation7 + $0x1] ss:$0 sm:$0xff]  ;;  %v167_v57 = vld [vmem:[#allocation5 + $0x188] sm:$0xff]  ;;  %v255_v59 = vld [vmem:[#allocation7 + $0x2] ss:$0 sm:$0xff] }
  0x20   :  { %186 = vmatpush.msra.mxu3 %v179_v41  ;;  %v166_v58 = vld [vmem:[#allocation5 + $0x180] sm:$0xff] }
  0x21   :  { %114 = vmatpush.msra.mxu1 %v95_v11  ;;  %151 = vmatpush.msra.mxu2 %v136_v25  ;;  %v256_v63 = vld [vmem:[#allocation7 + $0x3] ss:$0 sm:$0xff] }
  0x22   :  { %187 = vmatpush.msra.mxu3 %v178_v42 }
  0x23   :  { %115 = vmatpush.msra.mxu1 %v94_v12  ;;  %152 = vmatpush.msra.mxu2 %v135_v26 }
  0x24   :  { %188 = vmatpush.msra.mxu3 %v177_v43 }
  0x25   :  { %116 = vmatpush.msra.mxu1 %v93_v13  ;;  %153 = vmatpush.msra.mxu2 %v134_v27 }
  0x26   :  { %189 = vmatpush.msra.mxu3 %v176_v44 }
  0x27   :  { %117 = vmatpush.msra.mxu1 %v92_v14  ;;  %154 = vmatpush.msra.mxu2 %v133_v28 }
  0x28   :  { %190 = vmatpush.msra.mxu3 %v175_v45 }
  0x29   :  { %118 = vmatpush.msra.mxu1 %v91_v15  ;;  %155 = vmatpush.msra.mxu2 %v132_v29 }
  0x2a   :  { %191 = vmatpush.msra.mxu3 %v174_v46 }
  0x2b   :  { %119 = vmatpush.msra.mxu1 %v90_v16  ;;  %156 = vmatpush.msra.mxu2 %v131_v30 }
  0x2c   :  { %192 = vmatpush.msra.mxu3 %v173_v47 }
  0x2d   :  { %120 = vmatpush.msra.mxu1 %v89_v17  ;;  %157 = vmatpush.msra.mxu2 %v130_v31 }
  0x2e   :  { %193 = vmatpush.msra.mxu3 %v172_v48 }
  0x2f   :  { %121 = vmatpush.msra.mxu1 %v88_v18  ;;  %158 = vmatpush.msra.mxu2 %v129_v36 }
  0x30   :  { %194 = vmatpush.msra.mxu3 %v171_v49 }
  0x31   :  { %159 = vmatpush.msra.mxu2 %v128_v37 }
  0x32   :  { %195 = vmatpush.msra.mxu3 %v170_v50 }
  0x33   :  { %160 = vmatpush.msra.mxu2 %v127_v38 }
  0x34   :  { %196 = vmatpush.msra.mxu3 %v169_v51 }
  0x36   :  { %197 = vmatpush.msra.mxu3 %v168_v56 }
  0x38   :  { %198 = vmatpush.msra.mxu3 %v167_v57 }
  0x3a   :  { %199 = vmatpush.msra.mxu3 %v166_v58 }
  0x8f   :  { %v84_v33 = vpop.f32.mrf.mxu0 }
  0x90   :  { %v85_v34 = vadd.f32 %v253_v32, %v84_v33 }
  0x92   :  { %v87_v35 = vmax.f32 %v85_v34, 0.0 }
  0x94   :  { %122 = vmatmul.f32.vlgmr.msra.gmra.mxu1 %v87_v35 }
 0x111   :  { %v123_v53 = vpop.f32.mrf.mxu1 }
 0x112   :  { %v124_v54 = vadd.f32 %v254_v52, %v123_v53 }
 0x114   :  { %v126_v55 = vmax.f32 %v124_v54, 0.0 }
 0x116   :  { %161 = vmatmul.f32.vlgmr.msra.gmra.mxu2 %v126_v55 }
 0x199   :  { %v162_v60 = vpop.f32.mrf.mxu2 }
 0x19a   :  { %v163_v61 = vadd.f32 %v255_v59, %v162_v60 }
 0x19c   :  { %v165_v62 = vmax.f32 %v163_v61, 0.0 }
 0x19e   :  { %200 = vmatmul.f32.vlgmr.msra.gmra.mxu3 %v165_v62 }
 0x221   :  { %v201_v0 = vpop.f32.mrf.mxu3 }
 0x222   :  { %v202_v1 = vadd.f32 %v256_v63, %v201_v0 }
 0x224   :  { %204 = vmax.xlane.f32.xlu0 %v202_v1 }
 0x297   :  { %v205_v2 = vpop.xlane.xlu0 %204 }
 0x298   :  { %v206_v3 = vsub.f32 %v202_v1, %v205_v2 }
 0x29a   :  { %v207_v4 = vmul.f32 1.442695, %v206_v3 }
 0x29c   :  { %257 = vpow2.f32 %v207_v4 }
 0x2a2   :  { %v258_v5 = vpop.eup %257 }
 0x2a3   :  { %209 = vadd.xlane.f32.xlu0 %v258_v5 }
 0x316   :  { %v210_v6 = vpop.xlane.xlu0 %209 }
 0x317   :  { %259 = vrcp.f32 %v210_v6  ;;  %v222_v10 = vand.u32 2147483648, %v210_v6  ;;  %v220_v12 = vand.u32 2147483647, %v210_v6  ;;  %vm216_vm2 = vweird.f32 %v210_v6 }
 0x319   :  { %v223_v14 = vor.u32 1.1754944e-38, %v222_v10  ;;  %vm221_vm4 = vcmp.eq.f32.partialorder %v220_v12, 8.507059e+37 }
 0x31d   :  { %v260_v7 = vpop.eup %259 }
 0x31e   :  { %v212_v8 = vmul.f32 %v260_v7, %v210_v6  ;;  %vm217_vm1 = vweird.f32 %v260_v7 }
 0x31f   :  { %vm218_vm3 = vmor %vm216_vm2, %vm217_vm1 }
 0x320   :  { %v213_v9 = vsub.f32 1.0, %v212_v8 }
 0x322   :  { %v214_v11 = vmul.f32 %v260_v7, %v213_v9 }
 0x324   :  { %v215_v13 = vadd.f32 %v260_v7, %v214_v11 }
 0x326   :  { %v219_v15 = vsel %vm218_vm3, %v260_v7, %v215_v13 }
 0x327   :  { %v224_v16 = vsel %vm221_vm4, %v223_v14, %v219_v15 }
 0x328   :  { %v226_v17 = vmul.f32 %v258_v5, %v224_v16 }
 0x32a   :  { %227 = vst [vmem:[#allocation8] sm:$0xff] %v226_v17 }
 0x32b   :  { %238 = dma.vmem_to_hbm [thread:$0]  %s234_s2, 128, %s236_s30, [#allocation4]  }
 0x32c   :  { %361 = dma.done.wait [#allocation4], 128  }
 0x32d   :  { %362 = vsyncadd [#allocation4], 4294967168 }
 0x32e   :  { %243 = vsyncpa [#allocation3], 1 }
 0x32f   :  { %244 = vsyncpa [#allocation6], 1 }
 0x330   :  { %245 = vsyncpa [#allocation4], 1 }

</bundles_post_ra>
